<compile_context>
chip_gen: v7x
topology: tpu7x:2x2x1
jax: 0.10.0
libtpu: 0.0.40
codegen_flags: <defaults>
</compile_context>

<pallas_src>
import functools

import jax
import jax.numpy as jnp
import numpy as np
from jax.experimental import pallas as pl
from jax.experimental.pallas import tpu as pltpu


# ----------------------------------------------------------------------------- #
# Generation-aware VMEM limit (v7x has only 64 MiB / TC; v5e/v6e have 128 MiB)
# ----------------------------------------------------------------------------- #
def _default_vmem_limit():
    cap = 64 * 1024 * 1024  # safe default if the query is unavailable
    try:
        info_fn = getattr(pltpu, "get_tpu_info", None)
        if info_fn is not None:
            cap = int(getattr(info_fn(), "vmem_capacity_bytes", cap))
    except Exception:
        pass
    return int(max(32 * 1024 * 1024, min(cap * 3 // 4, 96 * 1024 * 1024)))


VMEM_LIMIT = _default_vmem_limit()


def _cparams(n_grid_axes):
    return pltpu.CompilerParams(
        dimension_semantics=("parallel",) * n_grid_axes,
        vmem_limit_bytes=VMEM_LIMIT,
    )


# ----------------------------------------------------------------------------- #
# Pallas kernels
# ----------------------------------------------------------------------------- #
def _conv3x3_kernel(x_ref, w_ref, s_ref, b_ref, o_ref, *, H, Wp, relu):
    """3x3 'same' conv on one flattened padded image + folded BN + optional ReLU.

    x_ref : (1, Hp*Wp + 2, C)  padded image, row-major flattened, bf16
    w_ref : (9, C, Cout)       tap-major weights, bf16
    s_ref : (1, Cout)          folded BN scale, f32
    b_ref : (1, Cout)          folded BN/conv bias, f32
    o_ref : (1, H*Wp, Cout)    raw output (last 2 columns of each padded row are junk)
    """
    MW = H * Wp
    acc = None
    for t in range(9):  # static, unrolled: 9 MXU calls accumulated in f32
        dy, dx = t // 3, t % 3
        xs = x_ref[0, pl.ds(dy * Wp + dx, MW), :]           # (MW, C) bf16
        wt = w_ref[t]                                       # (C, Cout) bf16
        p = jnp.dot(xs, wt, preferred_element_type=jnp.float32)
        acc = p if acc is None else acc + p
    y = acc * s_ref[...] + b_ref[...]                       # f32 epilogue
    if relu:
        y = jnp.maximum(y, 0.0)
    o_ref[0] = y.astype(o_ref.dtype)


def conv3x3_bn_relu(p, x, relu=True):
    """Conv2d(3x3, pad=1) + eval-BatchNorm + optional ReLU on NHWC bf16 activations."""
    N, H, W, C = x.shape
    Hp, Wp = H + 2, W + 2
    MW = H * Wp
    L = Hp * Wp + 2
    Cout = p["w"].shape[-1]
    xp = jnp.pad(x, ((0, 0), (1, 1), (1, 1), (0, 0)))
    xf = jnp.pad(xp.reshape(N, Hp * Wp, C), ((0, 0), (0, 2), (0, 0)))
    raw = pl.pallas_call(
        functools.partial(_conv3x3_kernel, H=H, Wp=Wp, relu=relu),
        out_shape=jax.ShapeDtypeStruct((N, MW, Cout), x.dtype),
        grid=(N,),
        in_specs=[
            pl.BlockSpec((1, L, C), lambda n: (n, 0, 0)),
            pl.BlockSpec((9, C, Cout), lambda n: (0, 0, 0)),
            pl.BlockSpec((1, Cout), lambda n: (0, 0)),
            pl.BlockSpec((1, Cout), lambda n: (0, 0)),
        ],
        out_specs=pl.BlockSpec((1, MW, Cout), lambda n: (n, 0, 0)),
        compiler_params=_cparams(1),
    )(xf, p["w"], p["scale"].reshape(1, Cout), p["bias"].reshape(1, Cout))
    # Drop the 2 junk columns introduced by convolving over the padded width.
    return raw.reshape(N, H, Wp, Cout)[:, :, :W, :]


def _maxpool_kernel(x_ref, o_ref, *, kk):
    acc = x_ref[0, 0]                       # (Ho, Wo, C)
    for t in range(1, kk):                  # static unroll; minor dims stay contiguous
        acc = jnp.maximum(acc, x_ref[0, t])
    o_ref[0] = acc


def maxpool(x, k):
    """nn.MaxPool2d(k) (stride=k) on NHWC tensors, one image per grid step."""
    if k == 1:
        return x
    N, H, W, C = x.shape
    Ho, Wo = H // k, W // k
    # Gather the k*k pooling taps onto one *leading* axis so the kernel only
    # integer-indexes major dims; the minor (Wo, C) slab stays lane-dense.
    xr = (x.reshape(N, Ho, k, Wo, k, C)
           .transpose(0, 2, 4, 1, 3, 5)
           .reshape(N, k * k, Ho, Wo, C))
    return pl.pallas_call(
        functools.partial(_maxpool_kernel, kk=k * k),
        out_shape=jax.ShapeDtypeStruct((N, Ho, Wo, C), x.dtype),
        grid=(N,),
        in_specs=[pl.BlockSpec((1, k * k, Ho, Wo, C),
                               lambda n: (n, 0, 0, 0, 0))],
        out_specs=pl.BlockSpec((1, Ho, Wo, C), lambda n: (n, 0, 0, 0)),
        compiler_params=_cparams(1),
    )(xr)


def _mm_bn_act_kernel(x_ref, w_ref, s_ref, b_ref, o_ref, *, relu):
    acc = jnp.dot(x_ref[...], w_ref[...], preferred_element_type=jnp.float32)
    y = acc * s_ref[...] + b_ref[...]
    if relu:
        y = jnp.maximum(y, 0.0)
    o_ref[...] = y.astype(o_ref.dtype)


def fused_matmul(x, w, scale, bias, *, relu, tm=256):
    """out = act(x @ w * scale + bias); M is cdiv-tiled (padded) so blocks stay bounded."""
    M, K = x.shape
    Np = w.shape[1]
    Mp = pl.cdiv(M, tm) * tm
    if Mp != M:
        x = jnp.pad(x, ((0, Mp - M), (0, 0)))
    out = pl.pallas_call(
        functools.partial(_mm_bn_act_kernel, relu=relu),
        out_shape=jax.ShapeDtypeStruct((Mp, Np), x.dtype),
        grid=(Mp // tm,),
        in_specs=[
            pl.BlockSpec((tm, K), lambda i: (i, 0)),
            pl.BlockSpec((K, Np), lambda i: (0, 0)),
            pl.BlockSpec((1, Np), lambda i: (0, 0)),
            pl.BlockSpec((1, Np), lambda i: (0, 0)),
        ],
        out_specs=pl.BlockSpec((tm, Np), lambda i: (i, 0)),
        compiler_params=_cparams(1),
    )(x, w, scale.reshape(1, Np), bias.reshape(1, Np))
    return out[:M]


# ----------------------------------------------------------------------------- #
# JAX glue (data movement only)
# ----------------------------------------------------------------------------- #
def upsample_nearest(x, s):
    if s == 1:
        return x
    N, H, W, C = x.shape
    x = jnp.broadcast_to(x[:, :, None, :, None, :], (N, H, s, W, s, C))
    return x.reshape(N, H * s, W * s, C)


def conv1x1_out(p, x, classes):
    N, H, W, C = x.shape
    y = fused_matmul(x.reshape(N * H * W, C), p["w"], p["scale"], p["bias"], relu=False)
    return y[:, :classes].reshape(N, H, W, classes)


# ----------------------------------------------------------------------------- #
# Parameter init (deterministic, synthetic) — folds Conv bias + eval-mode BN
# ----------------------------------------------------------------------------- #
def init_conv_bn(key, cin, cout, k=3, bn=True):
    k1, k2, k3, k4, k5, k6 = jax.random.split(key, 6)
    fan_in = cin * k * k
    w = jax.random.normal(k1, (k * k, cin, cout), jnp.float32) / np.sqrt(fan_in)
    b = 0.01 * jax.random.normal(k2, (cout,), jnp.float32)
    if bn:
        gamma = 1.0 + 0.1 * jax.random.normal(k3, (cout,), jnp.float32)
        beta = 0.05 * jax.random.normal(k4, (cout,), jnp.float32)
        mean = 0.1 * jax.random.normal(k5, (cout,), jnp.float32)
        var = 1.0 + 0.1 * jax.random.uniform(k6, (cout,), jnp.float32)
        s = gamma / jnp.sqrt(var + 1e-5)
        scale = s
        bias = s * (b - mean) + beta
    else:
        scale = jnp.ones((cout,), jnp.float32)
        bias = b
    return {"w": w.astype(jnp.bfloat16), "scale": scale, "bias": bias}


def fuse_branch_convs(branches):
    """Concat of per-branch 3x3 convs == one 3x3 conv with a block-diagonal weight."""
    cat = branches[0]["w"].shape[-1]
    cins = [b["w"].shape[1] for b in branches]
    ctot, nout = sum(cins), cat * len(branches)
    wf = jnp.zeros((9, ctot, nout), jnp.float32)
    off = 0
    for i, (b, ci) in enumerate(zip(branches, cins)):
        wf = wf.at[:, off:off + ci, i * cat:(i + 1) * cat].set(b["w"].astype(jnp.float32))
        off += ci
    return {"w": wf.astype(jnp.bfloat16),
            "scale": jnp.concatenate([b["scale"] for b in branches]),
            "bias": jnp.concatenate([b["bias"] for b in branches])}


IN_CH_PAD = 8  # the 1-channel input image is zero-padded to 8 channels (extra weight rows see 0)


def init_unet3plus(key, filters=8, classes=2):
    keys = iter(jax.random.split(key, 64))
    nxt = lambda: next(keys)
    dbl = lambda cin, cout: {"c1": init_conv_bn(nxt(), cin, cout),
                             "c2": init_conv_bn(nxt(), cout, cout)}
    cat = 64  # UNet3+ full-scale branch width (320 = 5*64 in the torch model)
    f = filters
    P = {
        "down1": dbl(IN_CH_PAD, f),   # input image padded 1 -> IN_CH_PAD channels with zeros
        "down2": dbl(f, 2 * f),
        "down3": dbl(2 * f, 4 * f),
        "down4": dbl(4 * f, 8 * f),
        "bridge": dbl(8 * f, 16 * f),
    }

    def stage(prev_c, down_cs, up_cs):
        branches = ([init_conv_bn(nxt(), prev_c, cat)]
                    + [init_conv_bn(nxt(), c, cat) for c in down_cs]
                    + [init_conv_bn(nxt(), c, cat) for c in up_cs])
        return {"branches": fuse_branch_convs(branches), "blk": dbl(5 * cat, 320)}

    P["up1"] = stage(16 * f, [f, 2 * f, 4 * f, 8 * f], [])
    P["up2"] = stage(320, [f, 2 * f, 4 * f], [16 * f])
    P["up3"] = stage(320, [f, 2 * f], [320, 16 * f])
    P["up4"] = stage(320, [f], [320, 320, 16 * f])

    # 1x1 OutConv: pad the class dim to 128 lanes (lane-dense stores), sliced back in glue.
    oc = init_conv_bn(nxt(), 320, classes, k=1, bn=False)
    ncls = 128 * max(1, pl.cdiv(classes, 128))
    P["outc"] = {
        "w": jnp.pad(oc["w"][0].astype(jnp.float32),
                     ((0, 0), (0, ncls - classes))).astype(jnp.bfloat16),
        "scale": jnp.pad(oc["scale"], (0, ncls - classes), constant_values=1.0),
        "bias": jnp.pad(oc["bias"], (0, ncls - classes)),
    }
    return P


# ----------------------------------------------------------------------------- #
# Forward pass (mirrors Unet3plus.forward); `classes` is static (jit via partial)
# ----------------------------------------------------------------------------- #
def unet3plus_forward(P, x_nchw, *, classes):
    x = jnp.transpose(x_nchw, (0, 2, 3, 1)).astype(jnp.bfloat16)  # NCHW -> NHWC bf16
    x = jnp.pad(x, ((0, 0), (0, 0), (0, 0), (0, IN_CH_PAD - x.shape[-1])))

    def block(p, y):
        # Conv3x3+BN+ReLU (+Dropout: identity in eval mode), twice.
        return conv3x3_bn_relu(p["c2"], conv3x3_bn_relu(p["c1"], y))

    def down(p, y):
        c = block(p, y)
        return c, maxpool(c, 2)

    c1, x1 = down(P["down1"], x)
    c2, x2 = down(P["down2"], x1)
    c3, x3 = down(P["down3"], x2)
    c4, x4 = down(P["down4"], x3)
    bridge = block(P["bridge"], x4)

    def up_stage(ps, prev, feats_down, kd, feats_up, ku):
        # Channel order matches [Up_Block 'up' conv | Concat down branches | Concat up branches].
        parts = [upsample_nearest(prev, 2)]
        parts += [maxpool(fm, k) for fm, k in zip(feats_down, kd)]
        parts += [upsample_nearest(fm, k) for fm, k in zip(feats_up, ku)]
        xin = jnp.concatenate(parts, axis=-1)
        y = conv3x3_bn_relu(ps["branches"], xin)  # fused block-diag conv -> lane-dense 320 ch
        return block(ps["blk"], y)

    x5 = up_stage(P["up1"], bridge, [c1, c2, c3, c4], [8, 4, 2, 1], [], [])
    x6 = up_stage(P["up2"], x5, [c1, c2, c3], [4, 2, 1], [bridge], [4])
    x7 = up_stage(P["up3"], x6, [c1, c2], [2, 1], [x5, bridge], [4, 8])
    x8 = up_stage(P["up4"], x7, [c1], [1], [x6, x5, bridge], [4, 8, 16])

    out = conv1x1_out(P["outc"], x8, classes)
    return jnp.transpose(out, (0, 3, 1, 2)).astype(jnp.float32)  # NHWC -> NCHW f32


# ----------------------------------------------------------------------------- #
if __name__ == "__main__":
    key = jax.random.PRNGKey(0)
    kp, kx, k1, k2, k3, k4 = jax.random.split(key, 6)

    # --- unit checks of the Pallas kernels vs pure-jnp references (loose bf16 tolerance) ---
    # 3x3 conv + folded BN + ReLU
    pc = init_conv_bn(k1, 8, 16)
    xt = jax.random.normal(k2, (2, 8, 8, 8), jnp.float32).astype(jnp.bfloat16)
    got = conv3x3_bn_relu(pc, xt).astype(jnp.float32)
    xpad = jnp.pad(xt.astype(jnp.float32), ((0, 0), (1, 1), (1, 1), (0, 0)))
    taps = [xpad[:, dy:dy + 8, dx:dx + 8, :] for dy in range(3) for dx in range(3)]
    ref = sum(jnp.einsum("nhwc,co->nhwo", t, pc["w"][i].astype(jnp.float32))
              for i, t in enumerate(taps))
    ref = jnp.maximum(ref * pc["scale"] + pc["bias"], 0.0)
    assert jnp.allclose(got, ref, rtol=5e-2, atol=5e-2), "conv3x3 kernel mismatch"

    # maxpool
    mp_in = jax.random.normal(k3, (2, 8, 8, 16), jnp.float32).astype(jnp.bfloat16)
    got = maxpool(mp_in, 2)
    ref = mp_in.reshape(2, 4, 2, 4, 2, 16).max(axis=(2, 4))
    assert jnp.array_equal(got, ref), "maxpool kernel mismatch"

    # fused matmul (1x1 conv path, padded-M tiling)
    xm = jax.random.normal(k4, (40, 32), jnp.float32).astype(jnp.bfloat16)
    wm = (0.1 * jax.random.normal(k1, (32, 128), jnp.float32)).astype(jnp.bfloat16)
    sm = 1.0 + 0.1 * jax.random.normal(k2, (128,), jnp.float32)
    bm = 0.1 * jax.random.normal(k3, (128,), jnp.float32)
    got = fused_matmul(xm, wm, sm, bm, relu=True).astype(jnp.float32)
    ref = jnp.maximum(xm.astype(jnp.float32) @ wm.astype(jnp.float32) * sm + bm, 0.0)
    assert jnp.allclose(got, ref, rtol=5e-2, atol=5e-2), "fused matmul kernel mismatch"

    # --- full model: filters=8, classes=2, input (2, 1, 16, 16) NCHW ---
    CLASSES = 2
    params = init_unet3plus(kp, filters=8, classes=CLASSES)
    x = jax.random.normal(kx, (2, 1, 16, 16), jnp.float32)

    fwd = jax.jit(functools.partial(unet3plus_forward, classes=CLASSES))
    out = jax.block_until_ready(fwd(params, x))

    assert out.shape == (2, CLASSES, 16, 16), out.shape
    assert bool(jnp.all(jnp.isfinite(out)))
    print("KERNEL_OK")
</pallas_src>

<mosaic_0001>
module attributes {stable_mosaic.version = 11 : i64} {
  func.func @_conv3x3_kernel(%arg0: i32, %arg1: memref<1x102x8xbf16, #tpu.memory_space<vmem>>, %arg2: memref<9x8x16xbf16, #tpu.memory_space<vmem>>, %arg3: memref<1x16xf32, #tpu.memory_space<vmem>>, %arg4: memref<1x16xf32, #tpu.memory_space<vmem>>, %arg5: memref<1x80x16xbf16, #tpu.memory_space<vmem>>) attributes {dimension_semantics = [#tpu.dimension_semantics<parallel>], iteration_bounds = array<i64: 2>, scalar_prefetch = 0 : i64, scratch_operands = 0 : i64, tpu.core_type = #tpu.core_type<tc>, window_params = [{transform_indices = @transform_0, window_bounds = array<i64: 1, 102, 8>}, {pipeline_mode = #tpu.pipeline_mode<synchronous>, transform_indices = @transform_1, window_bounds = array<i64: 9, 8, 16>}, {pipeline_mode = #tpu.pipeline_mode<synchronous>, transform_indices = @transform_2, window_bounds = array<i64: 1, 16>}, {pipeline_mode = #tpu.pipeline_mode<synchronous>, transform_indices = @transform_3, window_bounds = array<i64: 1, 16>}, {transform_indices = @transform_4, window_bounds = array<i64: 1, 80, 16>}]} {
    %c0 = arith.constant 0 : index
    %c0_0 = arith.constant 0 : index
    %c0_1 = arith.constant 0 : index
    %0 = vector.load %arg1[%c0, %c0_0, %c0_1] : memref<1x102x8xbf16, #tpu.memory_space<vmem>>, vector<1x80x8xbf16>
    %1 = vector.shape_cast %0 : vector<1x80x8xbf16> to vector<80x8xbf16>
    %c0_2 = arith.constant 0 : index
    %c0_3 = arith.constant 0 : index
    %c0_4 = arith.constant 0 : index
    %2 = vector.load %arg2[%c0_2, %c0_3, %c0_4] : memref<9x8x16xbf16, #tpu.memory_space<vmem>>, vector<1x8x16xbf16>
    %3 = vector.shape_cast %2 : vector<1x8x16xbf16> to vector<8x16xbf16>
    %cst = arith.constant dense<0.000000e+00> : vector<80x16xf32>
    %4 = tpu.matmul %1, %3, %cst {dimension_numbers = #tpu.dot_dimension_numbers<[1], [0], [0], [1], [0, 0, 1, 1], [], []>} : vector<80x8xbf16>, vector<8x16xbf16>, vector<80x16xf32> -> vector<80x16xf32>
    %c0_5 = arith.constant 0 : index
    %c1 = arith.constant 1 : index
    %c0_6 = arith.constant 0 : index
    %5 = vector.load %arg1[%c0_5, %c1, %c0_6] : memref<1x102x8xbf16, #tpu.memory_space<vmem>>, vector<1x80x8xbf16>
    %6 = vector.shape_cast %5 : vector<1x80x8xbf16> to vector<80x8xbf16>
    %c1_7 = arith.constant 1 : index
    %c0_8 = arith.constant 0 : index
    %c0_9 = arith.constant 0 : index
    %7 = vector.load %arg2[%c1_7, %c0_8, %c0_9] : memref<9x8x16xbf16, #tpu.memory_space<vmem>>, vector<1x8x16xbf16>
    %8 = vector.shape_cast %7 : vector<1x8x16xbf16> to vector<8x16xbf16>
    %cst_10 = arith.constant dense<0.000000e+00> : vector<80x16xf32>
    %9 = tpu.matmul %6, %8, %cst_10 {dimension_numbers = #tpu.dot_dimension_numbers<[1], [0], [0], [1], [0, 0, 1, 1], [], []>} : vector<80x8xbf16>, vector<8x16xbf16>, vector<80x16xf32> -> vector<80x16xf32>
    %10 = arith.addf %4, %9 : vector<80x16xf32>
    %c0_11 = arith.constant 0 : index
    %c2 = arith.constant 2 : index
    %c0_12 = arith.constant 0 : index
    %11 = vector.load %arg1[%c0_11, %c2, %c0_12] : memref<1x102x8xbf16, #tpu.memory_space<vmem>>, vector<1x80x8xbf16>
    %12 = vector.shape_cast %11 : vector<1x80x8xbf16> to vector<80x8xbf16>
    %c2_13 = arith.constant 2 : index
    %c0_14 = arith.constant 0 : index
    %c0_15 = arith.constant 0 : index
    %13 = vector.load %arg2[%c2_13, %c0_14, %c0_15] : memref<9x8x16xbf16, #tpu.memory_space<vmem>>, vector<1x8x16xbf16>
    %14 = vector.shape_cast %13 : vector<1x8x16xbf16> to vector<8x16xbf16>
    %cst_16 = arith.constant dense<0.000000e+00> : vector<80x16xf32>
    %15 = tpu.matmul %12, %14, %cst_16 {dimension_numbers = #tpu.dot_dimension_numbers<[1], [0], [0], [1], [0, 0, 1, 1], [], []>} : vector<80x8xbf16>, vector<8x16xbf16>, vector<80x16xf32> -> vector<80x16xf32>
    %16 = arith.addf %10, %15 : vector<80x16xf32>
    %c0_17 = arith.constant 0 : index
    %c10 = arith.constant 10 : index
    %c0_18 = arith.constant 0 : index
    %17 = vector.load %arg1[%c0_17, %c10, %c0_18] : memref<1x102x8xbf16, #tpu.memory_space<vmem>>, vector<1x80x8xbf16>
    %18 = vector.shape_cast %17 : vector<1x80x8xbf16> to vector<80x8xbf16>
    %c3 = arith.constant 3 : index
    %c0_19 = arith.constant 0 : index
    %c0_20 = arith.constant 0 : index
    %19 = vector.load %arg2[%c3, %c0_19, %c0_20] : memref<9x8x16xbf16, #tpu.memory_space<vmem>>, vector<1x8x16xbf16>
    %20 = vector.shape_cast %19 : vector<1x8x16xbf16> to vector<8x16xbf16>
    %cst_21 = arith.constant dense<0.000000e+00> : vector<80x16xf32>
    %21 = tpu.matmul %18, %20, %cst_21 {dimension_numbers = #tpu.dot_dimension_numbers<[1], [0], [0], [1], [0, 0, 1, 1], [], []>} : vector<80x8xbf16>, vector<8x16xbf16>, vector<80x16xf32> -> vector<80x16xf32>
    %22 = arith.addf %16, %21 : vector<80x16xf32>
    %c0_22 = arith.constant 0 : index
    %c11 = arith.constant 11 : index
    %c0_23 = arith.constant 0 : index
    %23 = vector.load %arg1[%c0_22, %c11, %c0_23] : memref<1x102x8xbf16, #tpu.memory_space<vmem>>, vector<1x80x8xbf16>
    %24 = vector.shape_cast %23 : vector<1x80x8xbf16> to vector<80x8xbf16>
    %c4 = arith.constant 4 : index
    %c0_24 = arith.constant 0 : index
    %c0_25 = arith.constant 0 : index
    %25 = vector.load %arg2[%c4, %c0_24, %c0_25] : memref<9x8x16xbf16, #tpu.memory_space<vmem>>, vector<1x8x16xbf16>
    %26 = vector.shape_cast %25 : vector<1x8x16xbf16> to vector<8x16xbf16>
    %cst_26 = arith.constant dense<0.000000e+00> : vector<80x16xf32>
    %27 = tpu.matmul %24, %26, %cst_26 {dimension_numbers = #tpu.dot_dimension_numbers<[1], [0], [0], [1], [0, 0, 1, 1], [], []>} : vector<80x8xbf16>, vector<8x16xbf16>, vector<80x16xf32> -> vector<80x16xf32>
    %28 = arith.addf %22, %27 : vector<80x16xf32>
    %c0_27 = arith.constant 0 : index
    %c12 = arith.constant 12 : index
    %c0_28 = arith.constant 0 : index
    %29 = vector.load %arg1[%c0_27, %c12, %c0_28] : memref<1x102x8xbf16, #tpu.memory_space<vmem>>, vector<1x80x8xbf16>
    %30 = vector.shape_cast %29 : vector<1x80x8xbf16> to vector<80x8xbf16>
    %c5 = arith.constant 5 : index
    %c0_29 = arith.constant 0 : index
    %c0_30 = arith.constant 0 : index
    %31 = vector.load %arg2[%c5, %c0_29, %c0_30] : memref<9x8x16xbf16, #tpu.memory_space<vmem>>, vector<1x8x16xbf16>
    %32 = vector.shape_cast %31 : vector<1x8x16xbf16> to vector<8x16xbf16>
    %cst_31 = arith.constant dense<0.000000e+00> : vector<80x16xf32>
    %33 = tpu.matmul %30, %32, %cst_31 {dimension_numbers = #tpu.dot_dimension_numbers<[1], [0], [0], [1], [0, 0, 1, 1], [], []>} : vector<80x8xbf16>, vector<8x16xbf16>, vector<80x16xf32> -> vector<80x16xf32>
    %34 = arith.addf %28, %33 : vector<80x16xf32>
    %c0_32 = arith.constant 0 : index
    %c20 = arith.constant 20 : index
    %c0_33 = arith.constant 0 : index
    %35 = vector.load %arg1[%c0_32, %c20, %c0_33] : memref<1x102x8xbf16, #tpu.memory_space<vmem>>, vector<1x80x8xbf16>
    %36 = vector.shape_cast %35 : vector<1x80x8xbf16> to vector<80x8xbf16>
    %c6 = arith.constant 6 : index
    %c0_34 = arith.constant 0 : index
    %c0_35 = arith.constant 0 : index
    %37 = vector.load %arg2[%c6, %c0_34, %c0_35] : memref<9x8x16xbf16, #tpu.memory_space<vmem>>, vector<1x8x16xbf16>
    %38 = vector.shape_cast %37 : vector<1x8x16xbf16> to vector<8x16xbf16>
    %cst_36 = arith.constant dense<0.000000e+00> : vector<80x16xf32>
    %39 = tpu.matmul %36, %38, %cst_36 {dimension_numbers = #tpu.dot_dimension_numbers<[1], [0], [0], [1], [0, 0, 1, 1], [], []>} : vector<80x8xbf16>, vector<8x16xbf16>, vector<80x16xf32> -> vector<80x16xf32>
    %40 = arith.addf %34, %39 : vector<80x16xf32>
    %c0_37 = arith.constant 0 : index
    %c21 = arith.constant 21 : index
    %c0_38 = arith.constant 0 : index
    %41 = vector.load %arg1[%c0_37, %c21, %c0_38] : memref<1x102x8xbf16, #tpu.memory_space<vmem>>, vector<1x80x8xbf16>
    %42 = vector.shape_cast %41 : vector<1x80x8xbf16> to vector<80x8xbf16>
    %c7 = arith.constant 7 : index
    %c0_39 = arith.constant 0 : index
    %c0_40 = arith.constant 0 : index
    %43 = vector.load %arg2[%c7, %c0_39, %c0_40] : memref<9x8x16xbf16, #tpu.memory_space<vmem>>, vector<1x8x16xbf16>
    %44 = vector.shape_cast %43 : vector<1x8x16xbf16> to vector<8x16xbf16>
    %cst_41 = arith.constant dense<0.000000e+00> : vector<80x16xf32>
    %45 = tpu.matmul %42, %44, %cst_41 {dimension_numbers = #tpu.dot_dimension_numbers<[1], [0], [0], [1], [0, 0, 1, 1], [], []>} : vector<80x8xbf16>, vector<8x16xbf16>, vector<80x16xf32> -> vector<80x16xf32>
    %46 = arith.addf %40, %45 : vector<80x16xf32>
    %c0_42 = arith.constant 0 : index
    %c22 = arith.constant 22 : index
    %c0_43 = arith.constant 0 : index
    %47 = vector.load %arg1[%c0_42, %c22, %c0_43] : memref<1x102x8xbf16, #tpu.memory_space<vmem>>, vector<1x80x8xbf16>
    %48 = vector.shape_cast %47 : vector<1x80x8xbf16> to vector<80x8xbf16>
    %c8 = arith.constant 8 : index
    %c0_44 = arith.constant 0 : index
    %c0_45 = arith.constant 0 : index
    %49 = vector.load %arg2[%c8, %c0_44, %c0_45] : memref<9x8x16xbf16, #tpu.memory_space<vmem>>, vector<1x8x16xbf16>
    %50 = vector.shape_cast %49 : vector<1x8x16xbf16> to vector<8x16xbf16>
    %cst_46 = arith.constant dense<0.000000e+00> : vector<80x16xf32>
    %51 = tpu.matmul %48, %50, %cst_46 {dimension_numbers = #tpu.dot_dimension_numbers<[1], [0], [0], [1], [0, 0, 1, 1], [], []>} : vector<80x8xbf16>, vector<8x16xbf16>, vector<80x16xf32> -> vector<80x16xf32>
    %52 = arith.addf %46, %51 : vector<80x16xf32>
    %c0_47 = arith.constant 0 : index
    %c0_48 = arith.constant 0 : index
    %53 = vector.load %arg3[%c0_47, %c0_48] : memref<1x16xf32, #tpu.memory_space<vmem>>, vector<1x16xf32>
    %54 = vector.broadcast %53 : vector<1x16xf32> to vector<80x16xf32>
    %55 = arith.mulf %52, %54 : vector<80x16xf32>
    %c0_49 = arith.constant 0 : index
    %c0_50 = arith.constant 0 : index
    %56 = vector.load %arg4[%c0_49, %c0_50] : memref<1x16xf32, #tpu.memory_space<vmem>>, vector<1x16xf32>
    %57 = vector.broadcast %56 : vector<1x16xf32> to vector<80x16xf32>
    %58 = arith.addf %55, %57 : vector<80x16xf32>
    %cst_51 = arith.constant 0.000000e+00 : f32
    %59 = vector.broadcast %cst_51 : f32 to vector<80x16xf32>
    %60 = arith.maximumf %58, %59 : vector<80x16xf32>
    %61 = arith.truncf %60 : vector<80x16xf32> to vector<80x16xbf16>
    %c0_52 = arith.constant 0 : index
    %c0_53 = arith.constant 0 : index
    %c0_54 = arith.constant 0 : index
    %62 = vector.load %arg5[%c0_52, %c0_53, %c0_54] : memref<1x80x16xbf16, #tpu.memory_space<vmem>>, vector<1x80x16xbf16>
    %63 = vector.shape_cast %62 : vector<1x80x16xbf16> to vector<80x16xbf16>
    %64 = vector.shape_cast %61 : vector<80x16xbf16> to vector<1x80x16xbf16>
    tpu.vector_store %arg5[%c0_52, %c0_53, %c0_54], %64 {strides = array<i32>} : memref<1x80x16xbf16, #tpu.memory_space<vmem>>, vector<1x80x16xbf16>,
    return
  }
  func.func @transform_0(%arg0: i32) -> (i32, i32, i32) {
    %c0_i32 = arith.constant 0 : i32
    %c0_i32_0 = arith.constant 0 : i32
    %c0_i32_1 = arith.constant 0 : i32
    return %arg0, %c0_i32, %c0_i32_0 : i32, i32, i32
  }
  func.func @transform_1(%arg0: i32) -> (i32, i32, i32) {
    %c0_i32 = arith.constant 0 : i32
    %c0_i32_0 = arith.constant 0 : i32
    %c0_i32_1 = arith.constant 0 : i32
    %c0_i32_2 = arith.constant 0 : i32
    return %c0_i32, %c0_i32_0, %c0_i32_1 : i32, i32, i32
  }
  func.func @transform_2(%arg0: i32) -> (i32, i32) {
    %c0_i32 = arith.constant 0 : i32
    %c0_i32_0 = arith.constant 0 : i32
    %c0_i32_1 = arith.constant 0 : i32
    return %c0_i32, %c0_i32_0 : i32, i32
  }
  func.func @transform_3(%arg0: i32) -> (i32, i32) {
    %c0_i32 = arith.constant 0 : i32
    %c0_i32_0 = arith.constant 0 : i32
    %c0_i32_1 = arith.constant 0 : i32
    return %c0_i32, %c0_i32_0 : i32, i32
  }
  func.func @transform_4(%arg0: i32) -> (i32, i32, i32) {
    %c0_i32 = arith.constant 0 : i32
    %c0_i32_0 = arith.constant 0 : i32
    %c0_i32_1 = arith.constant 0 : i32
    return %arg0, %c0_i32, %c0_i32_0 : i32, i32, i32
  }
}

</mosaic_0001>

<bundles_post_ra>
// kernel: tpu_custom_call.1
= control target key start
LH: loop header
LB: loop body
LE: loop exit
PB: predicated region body
PF: predicated region fallthrough
CT: control target
= control target key end

     0   :  { %s2181_s15 = smov 0   ;;  %s2673_s0 = inlined_call_operand.vmem [shape: bf16[2,102,8], index: 0, kind: input, shape index: {}]   ;;  %s2674_s1 = inlined_call_operand.vmem [shape: bf16[9,8,16], index: 1, kind: input, shape index: {}]   ;;  %s2675_s2 = inlined_call_operand.vmem [shape: f32[1,16], index: 2, kind: input, shape index: {}]   ;;  %s2676_s3 = inlined_call_operand.vmem [shape: f32[1,16], index: 3, kind: input, shape index: {}]   ;;  %s2677_s4 = inlined_call_operand.vmem [shape: bf16[2,80,16], index: 4, kind: output, shape index: {}]  }
   0x1 LB: > { %s1600_s16 = sadd.s32 4294967295, %s2152_s15   ;;  %p1604_p0 = scmp.ge.s32.totalorder %s2152_s15, 1  ;;  %s2152_s15 = sphi %s2181_s15, %s14_s15  }
   0x2   : > { %p162_p1 = scmp.lt.s32.totalorder %s2152_s15, 3 }
   0x4   : > { %p163_p2 = pnand %p1604_p0, %p162_p1 }
   0x5   : > { %vm302_vm0 = vcmask (!%p163_p2), 1043456   ;;  %v1643_v0 = vld [vmem:[%s2674_s1 + $0x10] sm:$0xf] (!%p163_p2)  ;;  %v1607_v1 = vld [vmem:[%s2674_s1 + $0x4] sm:$0xf] (!%p163_p2)  ;;  %v2154_v2 = vmov (!%p163_p2), 0.0  }
   0x6   : > { %166 = sbr.rel (%p163_p2) target bundleno = 430 (0x1ae), region = 36  ;;  %1849 = vmatprep.subr.bf16.mxu0 (!%p163_p2), %v2154_v2  ;;  %1761 = vmatprep.subr.bf16.mxu1 (!%p163_p2), %v2154_v2  ;;  %v2198_v3 = vsel (!%p163_p2), %vm302_vm0, %v1643_v0, 0  ;;  %v304_v4 = vsel (!%p163_p2), %vm302_vm0, %v1607_v1, 0  ;;  %p188_p3 = scmp.lt.s32.totalorder (!%p163_p2), %s1600_s16, 1  ;;  %vm2155_vm1 = vmmov (!%p163_p2), 0   ;;  %vm286_vm4 = vcmask (!%p163_p2), 64512  }
   0x7   : > { %1850 = vmatpush3.bf16.msra.mxu0 (!%p163_p2), %v2198_v3  ;;  %1762 = vmatpush3.bf16.msra.mxu1 (!%p163_p2), %v304_v4  ;;  %vm241_vm2 = vsmask.f32 (!%p163_p2), 7424  ;;  %vm743_vm3 = vsmask.f32 (!%p163_p2), 6400  ;;  %v209_v16 = vld [vmem:[%s2674_s1] sm:$0xf] (!%p163_p2) }
   0x8   : > { %1763 = vmatprep.mubr.msk.bf16.mxu1 (!%p163_p2), %vm2155_vm1, %v2154_v2  ;;  %1851 = vmatprep.mubr.msk.bf16.mxu0 (!%p163_p2), %vm2155_vm1, %v2154_v2  ;;  %v1650_v24 = vld [vmem:[%s2674_s1 + $0x14] sm:$0xf] (!%p163_p2)  ;;  %v390_v33 = vsel (!%p163_p2), %vm302_vm0, %v209_v16, 0  ;;  %vm904_vm5 = vcmask (!%p163_p2), 1045504   ;;  %vm471_vm6 = vcmask (!%p163_p2), 1046528   ;;  %vm1337_vm7 = vcmask (!%p163_p2), 1044480  }
   0x9   : > { %1871 = vmatprep.subr.bf16.mxu0 (!%p163_p2), %v2154_v2  ;;  %1783 = vmatprep.subr.bf16.mxu1 (!%p163_p2), %v2154_v2  ;;  %v932_v41 = vsel (!%p163_p2), %vm302_vm0, %v1650_v24, 0  ;;  %vm1176_vm8 = vsmask.f32 (!%p163_p2), 5376  ;;  %vm1534_vm9 = vcmask (!%p163_p2), 125952  }
   0xd   : > { %s2679_s16 = smov (!%p188_p3, %s1600_s16), 1 }
   0xe   : > { %s2111_s21 = smul.u32 52, %s2679_s16 }
   0xf   : > { %s2112_s19 = smul.u32 40, %s2679_s16 }
  0x10   : > { %s2214_s24 = scalar_lea.vmem %s2673_s0, %s2111_s21 }
  0x11   : > { %v199_v5 = vld [vmem:[%s2214_s24] sm:$0xf]  ;;  %v2218_v6 = vld [vmem:[%s2214_s24 + $0x4] sm:$0xf]  ;;  %v2224_v8 = vld [vmem:[%s2214_s24 + $0x8] sm:$0xff]   ;;  %s2632_s22 = scalar_lea.vmem %s2677_s4, %s2112_s19 }
  0x12   : > { %v2221_v7 = vcombine.low %v199_v5, %v2218_v6  ;;  %v584_v9 = vld [vmem:[%s2214_s24 + $0x4] sm:$0xe]  ;;  %v2228_v10 = vld [vmem:[%s2214_s24 + $0x8] sm:$0xf]  ;;  %v250_v13 = vshll.u32 %v2224_v8, 16  ;;  %v2237_v15 = vld [vmem:[%s2214_s24 + $0xc] sm:$0xff]  }
  0x13   : > { %v2234_v14 = vcombine.low %v584_v9, %v2228_v10  ;;  %v2243_v17 = vld [vmem:[%s2214_s24 + $0x10] sm:$0xff]   ;;  %v753_v22 = vshrl.u32 %v2237_v15, 16  ;;  %v756_v23 = vshll.u32 %v2237_v15, 16  ;;  %v254_v25 = vshrl.u32 %v2224_v8, 16  ;;  %v2262_v38 = vld [vmem:[%s2214_s24 + $0x1c] sm:$0xff]   ;;  %v2288_v57 = vld [vmem:[%s2214_s24 + $0x28] sm:$0xff]  }
  0x14   : > { %v243_v11 = vshrl.u32 %v2221_v7, 16  ;;  %v245_v12 = vshll.u32 %v2221_v7, 16  ;;  %v252_v19 = vrot.slane %v250_v13, 1  ;;  %v2254_v26 = vld [vmem:[%s2214_s24 + $0x14] sm:$0xff]   ;;  %v258_v30 = vshll.u32 %v2243_v17, 16  ;;  %v2283_v55 = vld [vmem:[%s2214_s24 + $0x20] sm:$0xff]  }
  0x15   : > { %v745_v20 = vshrl.u32 %v2234_v14, 16  ;;  %v748_v21 = vshll.u32 %v2234_v14, 16  ;;  %v755_v31 = vrot.slane %v753_v22, 1  ;;  %v758_v32 = vrot.slane %v756_v23, 2  ;;  %v2269_v45 = vld [vmem:[%s2214_s24 + $0x18] sm:$0xff]   ;;  %v2293_v60 = vld [vmem:[%s2214_s24 + $0x20] sm:$0xff]  }
  0x16   : > { %v247_v18 = vrot.slane %v245_v12, 1  ;;  %v762_v34 = vshrl.u32 %v2254_v26, 16  ;;  %v765_v37 = vshll.u32 %v2254_v26, 16  ;;  %v256_v42 = vor.u32 %v254_v25, %v252_v19  ;;  %v465_v61 = vld [vmem:[%s2214_s24] sm:$0xe] }
  0x17   : > { %v747_v28 = vrot.slane %v745_v20, 1  ;;  %v750_v29 = vrot.slane %v748_v21, 2  ;;  %v759_v39 = vor.u32 %v758_v32, %v755_v31  ;;  %v260_v43 = vrot.slane %v258_v30, 1  ;;  %v898_v4 = vld [vmem:[%s2214_s24 + $0x4] sm:$0xc] }
  0x18   : > { %v248_v27 = vor.u32 %v247_v18, %v243_v11  ;;  %v764_v40 = vrot.slane %v762_v34, 1  ;;  %v767_v44 = vrot.slane %v765_v37, 2  ;;  %v771_v47 = vshrl.u32 %v2262_v38, 16 }
  0x19   : > { %v751_v36 = vor.u32 %v750_v29, %v747_v28  ;;  %v774_v48 = vshll.u32 %v2262_v38, 16  ;;  %v261_v50 = vsel %vm241_vm2, %v256_v42, %v260_v43  ;;  %v262_v51 = vshrl.u32 %v2243_v17, 16  ;;  %v2335_v29 = vld [vmem:[%s2214_s24 + $0x28] ss:$0 sps:$4 sm:$0x11]  }
  0x1a   : > { %v253_v35 = vsel %vm241_vm2, %v248_v27, %v252_v19  ;;  %v768_v49 = vor.u32 %v767_v44, %v764_v40  ;;  %v266_v52 = vshll.u32 %v2269_v45, 16  ;;  %v773_v53 = vrot.slane %v771_v47, 1  ;;  %v2142_v19 = vld [vmem:[%s2214_s24 + $0x30] ss:$0 sps:$4 sm:$0x33]  }
  0x1b   : > { %1764 = vmatmul.mubr.msk.bf16.vlgmr.msra.gmra.mrb[0].mxu1 %vm286_vm4, %v253_v35  ;;  %v760_v46 = vsel %vm743_vm3, %v751_v36, %v759_v39  ;;  %v776_v54 = vrot.slane %v774_v48, 2  ;;  %v264_v58 = vor.u32 %v262_v51, %v260_v43  ;;  %v1625_v62 = vcombine.low %v465_v61, %v2218_v6  ;;  %v1331_v40 = vld [vmem:[%s2214_s24 + $0x8] sm:$0x8]  ;;  %v2364_v42 = vld [vmem:[%s2214_s24 + $0xc] sm:$0xf]  ;;  %v2372_v48 = vld [vmem:[%s2214_s24 + $0x10] sm:$0xff]  }
  0x1c   : > { %1767 = vmatprep.mubr.msk.bf16.mxu1 %vm2155_vm1, %v2154_v2  ;;  %1784 = vmatpush3.bf16.msra.mxu1 %v390_v33  ;;  %v769_v56 = vsel %vm743_vm3, %v759_v39, %v768_v49  ;;  %v268_v59 = vrot.slane %v266_v52, 1  ;;  %v473_v63 = vrot.slane %v2224_v8, 1  ;;  %v270_v1 = vshrl.u32 %v2269_v45, 16  ;;  %v2145_v44 = vld [vmem:[%s2214_s24 + $0x2c] ss:$0 sps:$4 sm:$0x11]  }
  0x1d   : > { %1805 = vmatprep.subr.bf16.mxu1 %v2154_v2  ;;  %1852 = vmatmul.mubr.msk.bf16.vlgmr.msra.gmra.mrb[0].mxu0 %vm286_vm4, %v760_v46  ;;  %v2299_v0 = vor.u32 %v776_v54, %v773_v53  ;;  %v475_v5 = vrot.slane %v2243_v17, 1  ;;  %v472_v9 = vrot.slane %v1625_v62, 1  ;;  %v1063_v11 = vrot.slane %v2283_v55, 2  ;;  %v2379_v53 = vld [vmem:[%s2214_s24 + $0x18] sm:$0xff]  }
  0x1e   : > { %1872 = vmatpush3.bf16.msra.mxu0 %v932_v41  ;;  %1855 = vmatprep.mubr.msk.bf16.mxu0 %vm2155_vm1, %v2154_v2  ;;  %v1065_v6 = vrot.slane %v2288_v57, 2  ;;  %v477_v12 = vrot.slane %v2269_v45, 1  ;;  %v269_v13 = vsel %vm241_vm2, %v264_v58, %v268_v59  ;;  %v274_v16 = vshll.u32 %v2293_v60, 16  ;;  %v2358_v41 = vld [vmem:[%s2214_s24 + $0x24] sm:$0xff]  }
  0x1f   : > { %1893 = vmatprep.subr.bf16.mxu0 %v2154_v2  ;;  %v2312_v18 = vsel %vm471_vm6, %v473_v63, %v475_v5  ;;  %v2316_v20 = vsel %vm471_vm6, %v472_v9, %v473_v63  ;;  %v1067_v23 = vrot.slane %v2142_v19, 2  ;;  %v778_v24 = vsel %vm743_vm3, %v768_v49, %v2299_v0 }
  0x20   : > { %v2321_v21 = vsel %vm904_vm5, %v1063_v11, %v1065_v6  ;;  %v2326_v22 = vsel %vm471_vm6, %v475_v5, %v477_v12  ;;  %v1651_v25 = vcombine.low %v898_v4, %v2228_v10  ;;  %v272_v27 = vor.u32 %v270_v1, %v268_v59 }
  0x21   : > { %v276_v28 = vrot.slane %v274_v16, 1  ;;  %v2338_v30 = vsel %vm904_vm5, %v1065_v6, %v1067_v23  ;;  %v625_v31 = vrot.slane %v2234_v14, 1  ;;  %v626_v10 = vrot.slane %v2237_v15, 1  ;;  %v1657_v14 = vld [vmem:[%s2674_s1 + $0x18] sm:$0xf] }
  0x22   : > { %v905_v32 = vrot.slane %v1651_v25, 2  ;;  %v906_v33 = vrot.slane %v2237_v15, 2  ;;  %v628_v34 = vrot.slane %v2254_v26, 1  ;;  %v278_v36 = vshrl.u32 %v2293_v60, 16 }
  0x23   : > { %1768 = vmatmul.mubr.msk.bf16.gmra.mrb[4].mxu1 %vm286_vm4, %v261_v50  ;;  %v277_v35 = vsel %vm241_vm2, %v272_v27, %v276_v28  ;;  %v282_v37 = vshll.u32 %v2335_v29, 16  ;;  %v2354_v39 = vsel %vm471_vm6, %v625_v31, %v626_v10  ;;  %v630_v43 = vrot.slane %v2262_v38, 1  ;;  %v2135_v25 = vld [vmem:[%s2214_s24 + $0x2c] ss:$0 sps:$4 sm:$0x33]  }
  0x24   : > { %1771 = vmatprep.mubr.msk.bf16.mxu1 %vm2155_vm1, %v2154_v2  ;;  %v2361_v15 = vsel %vm471_vm6, %v626_v10, %v628_v34  ;;  %v907_v46 = vsel %vm904_vm5, %v905_v32, %v906_v33  ;;  %v1085_v47 = vsel %vm302_vm0, %v1657_v14, 0  ;;  %v632_v49 = vrot.slane %v2358_v41, 1  ;;  %v1624_v31 = vld [vmem:[%s2674_s1 + $0x8] sm:$0xf] }
  0x25   : > { %1856 = vmatmul.mubr.msk.bf16.gmra.mrb[4].mxu0 %vm286_vm4, %v769_v56  ;;  %v1677_v50 = vcombine.low %v1331_v40, %v2364_v42  ;;  %v280_v51 = vor.u32 %v278_v36, %v276_v28  ;;  %v284_v52 = vrot.slane %v282_v37, 1  ;;  %v2382_v54 = vsel %vm471_vm6, %v628_v34, %v630_v43 }
  0x26   : > { %1859 = vmatprep.mubr.msk.bf16.mxu0 %vm2155_vm1, %v2154_v2  ;;  %v2385_v56 = vsel %vm471_vm6, %v630_v43, %v632_v49  ;;  %v1339_v59 = vrot.slane %v2372_v48, 3  ;;  %v634_v61 = vrot.slane %v2145_v44, 1  ;;  %v1341_v62 = vrot.slane %v2379_v53, 3 }
  0x27   : > { %v1338_v58 = vrot.slane %v1677_v50, 3  ;;  %v908_v63 = vrot.slane %v2254_v26, 2  ;;  %v780_v4 = vshrl.u32 %v2358_v41, 16  ;;  %v783_v5 = vshll.u32 %v2358_v41, 16 }
  0x28   : > { %v285_v9 = vsel %vm241_vm2, %v280_v51, %v284_v52  ;;  %v2401_v6 = vsel %vm471_vm6, %v632_v49, %v634_v61  ;;  %v910_v10 = vrot.slane %v2262_v38, 2  ;;  %v789_v32 = vshrl.u32 %v2135_v25, 16  ;;  %v2435_v38 = vld [vmem:[%s2214_s24 + $0x30] ss:$0 sps:$4 sm:$0x77]  }
  0x29   : > { %v2394_v1 = vsel %vm1337_vm7, %v1338_v58, %v1339_v59  ;;  %v782_v16 = vrot.slane %v780_v4, 1  ;;  %v785_v19 = vrot.slane %v783_v5, 2  ;;  %v909_v26 = vsel %vm904_vm5, %v906_v33, %v908_v63  ;;  %v1669_v58 = vld [vmem:[%s2674_s1 + $0x1c] sm:$0xf] }
  0x2a   : > { %v792_v33 = vshll.u32 %v2135_v25, 16  ;;  %v791_v34 = vrot.slane %v789_v32, 1  ;;  %v911_v14 = vsel %vm904_vm5, %v908_v63, %v910_v10  ;;  %v1345_v37 = vrot.slane %v2288_v57, 3 }
  0x2b   : > { %1772 = vmatmul.mubr.msk.bf16.gmra.mrb[8].mxu1 %vm286_vm4, %v269_v13  ;;  %v2404_v13 = vsel %vm1337_vm7, %v1339_v59, %v1341_v62  ;;  %v786_v23 = vor.u32 %v785_v19, %v782_v16  ;;  %v1347_v44 = vrot.slane %v2435_v38, 3  ;;  %v914_v49 = vrot.slane %v2135_v25, 2 }
  0x2c   : > { %1775 = vmatprep.mubr.msk.bf16.mxu1 %vm2155_vm1, %v2154_v2  ;;  %v1059_v52 = vrot.slane %v2372_v48, 2  ;;  %v1061_v59 = vrot.slane %v2379_v53, 2  ;;  %v1186_v5 = vshrl.u32 %v2372_v48, 16 }
  0x2d   : > { %1860 = vmatmul.mubr.msk.bf16.gmra.mrb[8].mxu0 %vm286_vm4, %v778_v24  ;;  %v1343_v24 = vrot.slane %v2283_v55, 3  ;;  %v2414_v27 = vsel %vm743_vm3, %v2299_v0, %v786_v23  ;;  %v499_v0 = vsel %vm302_vm0, %v1624_v31, 0 }
  0x2e   : > { %1873 = vmatprep.mubr.msk.bf16.mxu0 %vm2155_vm1, %v2154_v2  ;;  %v1062_v61 = vsel %vm904_vm5, %v1059_v52, %v1061_v59  ;;  %v1064_v4 = vsel %vm904_vm5, %v1061_v59, %v1063_v11  ;;  %v1188_v19 = vrot.slane %v1186_v5, 2 }
  0x2f   : > { %v2417_v28 = vsel %vm1337_vm7, %v1341_v62, %v1343_v24  ;;  %v2441_v43 = vsel %vm1337_vm7, %v1343_v24, %v1345_v37  ;;  %v1631_v62 = vld [vmem:[%s2674_s1 + $0xc] sm:$0xf]  ;;  %v1195_v24 = vshrl.u32 %v2379_v53, 16 }
  0x30   : > { %v652_v63 = vsel %vm302_vm0, %v1631_v62, 0 }
  0x31   : > { %v1197_v31 = vrot.slane %v1195_v24, 2 }
  0x33   : > { %1776 = vmatmul.mubr.msk.bf16.gmra.mrb[12].mxu1 %vm286_vm4, %v277_v35  ;;  %v794_v35 = vrot.slane %v792_v33, 2  ;;  %v1207_v33 = vshll.u32 %v2283_v55, 16 }
  0x34   : > { %1779 = vmatprep.mubr.msk.bf16.mxu1 %vm2155_vm1, %v2154_v2 }
  0x35   : > { %1874 = vmatmul.mubr.msk.bf16.vlgmr.msra.gmra.mrb[0].mxu0 %vm286_vm4, %v907_v46  ;;  %v795_v36 = vor.u32 %v794_v35, %v791_v34  ;;  %v2449_v46 = vsel %vm1337_vm7, %v1345_v37, %v1347_v44 }
  0x36   : > { %1894 = vmatpush3.bf16.msra.mxu0 %v1085_v47  ;;  %1877 = vmatprep.mubr.msk.bf16.mxu0 %vm2155_vm1, %v2154_v2 }
  0x37   : > { %1915 = vmatprep.subr.bf16.mxu0 %v2154_v2  ;;  %v2438_v40 = vsel %vm743_vm3, %v786_v23, %v795_v36  ;;  %v1213_v36 = vshrl.u32 %v2288_v57, 16 }
  0x3b   : > { %1780 = vmatmul.mubr.msk.bf16.gmra.mrb[16].mxu1 %vm286_vm4, %v285_v9  ;;  %v1189_v9 = vshll.u32 %v2372_v48, 16 }
  0x3c   : > { %1785 = vmatprep.mubr.msk.bf16.mxu1 %vm2155_vm1, %v2154_v2 }
  0x3d   : > { %1878 = vmatmul.mubr.msk.bf16.gmra.mrb[4].mxu0 %vm286_vm4, %v909_v26  ;;  %v1191_v26 = vrot.slane %v1189_v9, 3 }
  0x3e   : > { %1881 = vmatprep.mubr.msk.bf16.mxu0 %vm2155_vm1, %v2154_v2 }
  0x3f   : > { %v1192_v48 = vor.u32 %v1191_v26, %v1188_v19 }
  0x43   : > { %1786 = vmatmul.mubr.msk.bf16.vlgmr.msra.gmra.mrb[0].mxu1 %vm286_vm4, %v2221_v7  ;;  %v912_v7 = vrot.slane %v2358_v41, 2  ;;  %v1017_v41 = vld [vmem:[%s2214_s24 + $0x8] sm:$0xc] }
  0x44   : > { %1789 = vmatprep.mubr.msk.bf16.mxu1 %vm2155_vm1, %v2154_v2  ;;  %1806 = vmatpush3.bf16.msra.mxu1 %v499_v0  ;;  %v1658_v51 = vcombine.low %v1017_v41, %v2364_v42  ;;  %v1246_v42 = vsel %vm302_vm0, %v1669_v58, 0 }
  0x45   : > { %1827 = vmatprep.subr.bf16.mxu1 %v2154_v2  ;;  %1882 = vmatmul.mubr.msk.bf16.gmra.mrb[8].mxu0 %vm286_vm4, %v911_v14  ;;  %v913_v47 = vsel %vm904_vm5, %v910_v10, %v912_v7  ;;  %v915_v50 = vsel %vm904_vm5, %v912_v7, %v914_v49  ;;  %v1209_v14 = vrot.slane %v1207_v33, 3  ;;  %v1215_v7 = vrot.slane %v1213_v36, 2 }
  0x46   : > { %1885 = vmatprep.mubr.msk.bf16.mxu0 %vm2155_vm1, %v2154_v2  ;;  %v1178_v11 = vshrl.u32 %v1658_v51, 16  ;;  %v1225_v49 = vshll.u32 %v2435_v38, 16 }
  0x48   : > { %v1180_v16 = vrot.slane %v1178_v11, 2 }
  0x4b   : > { %1790 = vmatmul.mubr.msk.bf16.gmra.mrb[4].mxu1 %vm286_vm4, %v2224_v8  ;;  %v1058_v8 = vrot.slane %v1658_v51, 2 }
  0x4c   : > { %1793 = vmatprep.mubr.msk.bf16.mxu1 %vm2155_vm1, %v2154_v2 }
  0x4d   : > { %1886 = vmatmul.mubr.msk.bf16.gmra.mrb[12].mxu0 %vm286_vm4, %v913_v47 }
  0x4e   : > { %1889 = vmatprep.mubr.msk.bf16.mxu0 %vm2155_vm1, %v2154_v2 }
  0x53   : > { %1794 = vmatmul.mubr.msk.bf16.gmra.mrb[8].mxu1 %vm286_vm4, %v2243_v17  ;;  %v1060_v17 = vsel %vm904_vm5, %v1058_v8, %v1059_v52 }
  0x54   : > { %1797 = vmatprep.mubr.msk.bf16.mxu1 %vm2155_vm1, %v2154_v2 }
  0x55   : > { %1890 = vmatmul.mubr.msk.bf16.gmra.mrb[16].mxu0 %vm286_vm4, %v915_v50  ;;  %v1227_v50 = vrot.slane %v1225_v49, 3 }
  0x56   : > { %1895 = vmatprep.mubr.msk.bf16.mxu0 %vm2155_vm1, %v2154_v2 }
  0x5b   : > { %1798 = vmatmul.mubr.msk.bf16.gmra.mrb[12].mxu1 %vm286_vm4, %v2269_v45  ;;  %v481_v45 = vrot.slane %v2335_v29, 1 }
  0x5c   : > { %1801 = vmatprep.mubr.msk.bf16.mxu1 %vm2155_vm1, %v2154_v2 }
  0x5d   : > { %1896 = vmatmul.mubr.msk.bf16.vlgmr.msra.gmra.mrb[0].mxu0 %vm286_vm4, %v1060_v17  ;;  %v2622_v17 = vld [vmem:[%s2676_s3] ss:$0 sm:$0xff] }
  0x5e   : > { %1916 = vmatpush3.bf16.msra.mxu0 %v1246_v42  ;;  %1899 = vmatprep.mubr.msk.bf16.mxu0 %vm2155_vm1, %v2154_v2 }
  0x5f   : > { %1937 = vmatprep.subr.bf16.mxu0 %v2154_v2 }
  0x63   : > { %1802 = vmatmul.mubr.msk.bf16.gmra.mrb[16].mxu1 %vm286_vm4, %v2293_v60 }
  0x64   : > { %1807 = vmatprep.mubr.msk.bf16.mxu1 %vm2155_vm1, %v2154_v2 }
  0x65   : > { %1900 = vmatmul.mubr.msk.bf16.gmra.mrb[4].mxu0 %vm286_vm4, %v1062_v61 }
  0x66   : > { %1903 = vmatprep.mubr.msk.bf16.mxu0 %vm2155_vm1, %v2154_v2 }
  0x6b   : > { %1808 = vmatmul.mubr.msk.bf16.vlgmr.msra.gmra.mrb[0].mxu1 %vm286_vm4, %v2316_v20  ;;  %v1181_v20 = vshll.u32 %v1658_v51, 16 }
  0x6c   : > { %1811 = vmatprep.mubr.msk.bf16.mxu1 %vm2155_vm1, %v2154_v2  ;;  %1828 = vmatpush3.bf16.msra.mxu1 %v652_v63 }
  0x6d   : > { %1959 = vmatprep.subr.bf16.mxu1 %v2154_v2  ;;  %1904 = vmatmul.mubr.msk.bf16.gmra.mrb[8].mxu0 %vm286_vm4, %v1064_v4 }
  0x6e   : > { %1907 = vmatprep.mubr.msk.bf16.mxu0 %vm2155_vm1, %v2154_v2 }
  0x73   : > { %1812 = vmatmul.mubr.msk.bf16.gmra.mrb[4].mxu1 %vm286_vm4, %v2312_v18  ;;  %v1183_v18 = vrot.slane %v1181_v20, 3 }
  0x74   : > { %1815 = vmatprep.mubr.msk.bf16.mxu1 %vm2155_vm1, %v2154_v2 }
  0x75   : > { %1908 = vmatmul.mubr.msk.bf16.gmra.mrb[12].mxu0 %vm286_vm4, %v2321_v21  ;;  %v479_v21 = vrot.slane %v2293_v60, 1  ;;  %v1184_v23 = vor.u32 %v1183_v18, %v1180_v16  ;;  %v1676_v60 = vld [vmem:[%s2674_s1 + $0x20] sm:$0xf] }
  0x76   : > { %1911 = vmatprep.mubr.msk.bf16.mxu0 %vm2155_vm1, %v2154_v2  ;;  %v1365_v32 = vsel %vm302_vm0, %v1676_v60, 0 }
  0x77   : > { %v480_v25 = vsel %vm471_vm6, %v477_v12, %v479_v21  ;;  %v482_v0 = vsel %vm471_vm6, %v479_v21, %v481_v45 }
  0x7b   : > { %1816 = vmatmul.mubr.msk.bf16.gmra.mrb[8].mxu1 %vm286_vm4, %v2326_v22  ;;  %v1198_v22 = vshll.u32 %v2379_v53, 16  ;;  %v1204_v53 = vshrl.u32 %v2283_v55, 16  ;;  %v1216_v55 = vshll.u32 %v2288_v57, 16  ;;  %v1222_v57 = vshrl.u32 %v2435_v38, 16 }
  0x7c   : > { %1819 = vmatprep.mubr.msk.bf16.mxu1 %vm2155_vm1, %v2154_v2 }
  0x7d   : > { %1912 = vmatmul.mubr.msk.bf16.gmra.mrb[16].mxu0 %vm286_vm4, %v2338_v30  ;;  %v1193_v30 = vsel %vm1176_vm8, %v1184_v23, %v1192_v48  ;;  %v1200_v10 = vrot.slane %v1198_v22, 3  ;;  %v1206_v35 = vrot.slane %v1204_v53, 2  ;;  %v1218_v44 = vrot.slane %v1216_v55, 3 }
  0x7e   : > { %1917 = vmatprep.mubr.msk.bf16.mxu0 %vm2155_vm1, %v2154_v2  ;;  %v1224_v41 = vrot.slane %v1222_v57, 2 }
  0x7f   : > { %v1201_v12 = vor.u32 %v1200_v10, %v1197_v31  ;;  %v1210_v29 = vor.u32 %v1209_v14, %v1206_v35  ;;  %v1219_v47 = vor.u32 %v1218_v44, %v1215_v7 }
  0x81   : > { %v1202_v34 = vsel %vm1176_vm8, %v1192_v48, %v1201_v12  ;;  %v1211_v37 = vsel %vm1176_vm8, %v1201_v12, %v1210_v29 }
  0x83   : > { %1820 = vmatmul.mubr.msk.bf16.gmra.mrb[12].mxu1 %vm286_vm4, %v480_v25 }
  0x84   : > { %1823 = vmatprep.mubr.msk.bf16.mxu1 %vm2155_vm1, %v2154_v2 }
  0x85   : > { %1918 = vmatmul.mubr.msk.bf16.vlgmr.msra.gmra.mrb[0].mxu0 %vm286_vm4, %v1193_v30 }
  0x86   : > { %1938 = vmatpush3.bf16.msra.mxu0 %v1365_v32  ;;  %1921 = vmatprep.mubr.msk.bf16.mxu0 %vm2155_vm1, %v2154_v2 }
  0x8b   : > { %1824 = vmatmul.mubr.msk.bf16.gmra.mrb[16].mxu1 %vm286_vm4, %v482_v0 }
  0x8c   : > { %1829 = vmatprep.mubr.msk.bf16.mxu1 %vm2155_vm1, %v2154_v2 }
  0x8d   : > { %1922 = vmatmul.mubr.msk.bf16.gmra.mrb[4].mxu0 %vm286_vm4, %v1202_v34 }
  0x8e   : > { %1925 = vmatprep.mubr.msk.bf16.mxu0 %vm2155_vm1, %v2154_v2 }
  0x93   : > { %1830 = vmatmul.mubr.msk.bf16.vlgmr.msra.gmra.mrb[0].mxu1 %vm286_vm4, %v2354_v39  ;;  %v1220_v39 = vsel %vm1176_vm8, %v1210_v29, %v1219_v47 }
  0x94   : > { %1833 = vmatprep.mubr.msk.bf16.mxu1 %vm2155_vm1, %v2154_v2  ;;  %1960 = vmatpush3.bf16.msra.mxu1 %v2198_v3  ;;  %v1228_v3 = vor.u32 %v1227_v50, %v1224_v41 }
  0x95   : > { %1926 = vmatmul.mubr.msk.bf16.gmra.mrb[8].mxu0 %vm286_vm4, %v1211_v37 }
  0x96   : > { %1929 = vmatprep.mubr.msk.bf16.mxu0 %vm2155_vm1, %v2154_v2  ;;  %v1229_v38 = vsel %vm1176_vm8, %v1219_v47, %v1228_v3 }
  0x9b   : > { %1834 = vmatmul.mubr.msk.bf16.gmra.mrb[4].mxu1 %vm286_vm4, %v2361_v15 }
  0x9c   : > { %1837 = vmatprep.mubr.msk.bf16.mxu1 %vm2155_vm1, %v2154_v2 }
  0x9d   : > { %1930 = vmatmul.mubr.msk.bf16.gmra.mrb[12].mxu0 %vm286_vm4, %v1220_v39 }
  0x9e   : > { %1933 = vmatprep.mubr.msk.bf16.mxu0 %vm2155_vm1, %v2154_v2 }
  0xa3   : > { %1838 = vmatmul.mubr.msk.bf16.gmra.mrb[8].mxu1 %vm286_vm4, %v2382_v54 }
  0xa4   : > { %1841 = vmatprep.mubr.msk.bf16.mxu1 %vm2155_vm1, %v2154_v2 }
  0xa5   : > { %1934 = vmatmul.mubr.msk.bf16.gmra.mrb[16].mxu0 %vm286_vm4, %v1229_v38 }
  0xa6   : > { %1939 = vmatprep.mubr.msk.bf16.mxu0 %vm2155_vm1, %v2154_v2 }
  0xab   : > { %1842 = vmatmul.mubr.msk.bf16.gmra.mrb[12].mxu1 %vm286_vm4, %v2385_v56 }
  0xac   : > { %1845 = vmatprep.mubr.msk.bf16.mxu1 %vm2155_vm1, %v2154_v2 }
  0xad   : > { %1940 = vmatmul.mubr.msk.bf16.vlgmr.msra.gmra.mrb[0].mxu0 %vm286_vm4, %v2394_v1 }
  0xae   : > { %1943 = vmatprep.mubr.msk.bf16.mxu0 %vm2155_vm1, %v2154_v2 }
  0xb3   : > { %1846 = vmatmul.mubr.msk.bf16.gmra.mrb[16].mxu1 %vm286_vm4, %v2401_v6 }
  0xb4   : > { %1863 = vmatprep.mubr.msk.bf16.mxu1 %vm2155_vm1, %v2154_v2 }
  0xb5   : > { %1944 = vmatmul.mubr.msk.bf16.gmra.mrb[4].mxu0 %vm286_vm4, %v2404_v13 }
  0xb6   : > { %1947 = vmatprep.mubr.msk.bf16.mxu0 %vm2155_vm1, %v2154_v2 }
  0xbb   : > { %1864 = vmatmul.mubr.msk.bf16.vlgmr.msra.gmra.mrb[12].mxu1 %vm286_vm4, %v2414_v27 }
  0xbc   : > { %1867 = vmatprep.mubr.msk.bf16.mxu1 %vm2155_vm1, %v2154_v2 }
  0xbd   : > { %1948 = vmatmul.mubr.msk.bf16.gmra.mrb[8].mxu0 %vm286_vm4, %v2417_v28 }
  0xbe   : > { %1951 = vmatprep.mubr.msk.bf16.mxu0 %vm2155_vm1, %v2154_v2 }
  0xc3   : > { %1868 = vmatmul.mubr.msk.bf16.gmra.mrb[16].mxu1 %vm286_vm4, %v2438_v40 }
  0xc5   : > { %1952 = vmatmul.mubr.msk.bf16.gmra.mrb[12].mxu0 %vm286_vm4, %v2441_v43 }
  0xc6   : > { %1955 = vmatprep.mubr.msk.bf16.mxu0 %vm2155_vm1, %v2154_v2  ;;  %v2617_v2 = vld [vmem:[%s2675_s2] ss:$0 sm:$0xff] }
  0xcd   : > { %1956 = vmatmul.mubr.msk.bf16.gmra.mrb[16].mxu0 %vm286_vm4, %v2449_v46 }
 0x166   : > { %v688_v15 = vpop.f32.mrb[0].mxu1 }
 0x167   : > { %v1831_v54 = vpop.f32.mrb[1].mxu1 }
 0x168   : > { %v691_v56 = vpop.f32.mrb[2].mxu1 }
 0x169   : > { %v1832_v1 = vpop.f32.mrb[3].mxu1 }
 0x16e   : > { %v696_v6 = vpop.f32.mrb[4].mxu1 }
 0x16f   : > { %v1835_v13 = vpop.f32.mrb[5].mxu1 }
 0x170   : > { %v699_v27 = vpop.f32.mrb[6].mxu1 }
 0x171   : > { %v1836_v28 = vpop.f32.mrb[7].mxu1 }
 0x176   : > { %v704_v51 = vpop.f32.mrb[8].mxu1 }
 0x177   : > { %v1839_v40 = vpop.f32.mrb[9].mxu1 }
 0x178   : > { %v707_v8 = vpop.f32.mrb[10].mxu1 }
 0x179   : > { %v1840_v52 = vpop.f32.mrb[11].mxu1 }
 0x180   : > { %v1401_v43 = vpop.f32.mrb[0].mxu0 }
 0x181   : > { %v1961_v46 = vadd.f32 %v1401_v43, %v688_v15  ;;  %v1941_v58 = vpop.f32.mrb[1].mxu0 }
 0x182   : > { %v1404_v42 = vpop.f32.mrb[2].mxu0 }
 0x183   : > { %v1457_v59 = vmul.f32 %v1961_v46, %v2617_v2  ;;  %v1962_v61 = vadd.f32 %v1404_v42, %v691_v56  ;;  %v1942_v62 = vpop.f32.mrb[3].mxu0 }
 0x185   : > { %v1474_v63 = vadd.f32 %v2622_v17, %v1457_v59  ;;  %v1458_v4 = vmul.f32 %v1962_v61, %v2617_v2 }
 0x187   : > { %v1484_v11 = vmax.f32 %v1474_v63, 0.0  ;;  %v1475_v20 = vadd.f32 %v2622_v17, %v1458_v4 }
 0x188   : > { %v1409_v5 = vpop.f32.mrb[4].mxu0 }
 0x189   : > { %v1697_v9 = vpack.c.bf16 %v1484_v11, %v1484_v11  ;;  %v1485_v16 = vmax.f32 %v1475_v20, 0.0  ;;  %v1963_v18 = vadd.f32 %v1409_v5, %v696_v6  ;;  %v1945_v19 = vpop.f32.mrb[5].mxu0 }
 0x18a   : > { %v1412_v26 = vpop.f32.mrb[6].mxu0 }
 0x18b   : > { %1535 = vst.msk [vmem:[%s2632_s22] sm:$0xf] %vm1534_vm9, %v1697_v9  ;;  %v1698_v21 = vpack.c.bf16 %v1485_v16, %v1485_v16  ;;  %v1459_v23 = vmul.f32 %v1963_v18, %v2617_v2  ;;  %v1964_v48 = vadd.f32 %v1412_v26, %v699_v27  ;;  %v1946_v24 = vpop.f32.mrb[7].mxu0 }
 0x18d   : > { %1536 = vst.msk [vmem:[%s2632_s22 + $0x4] sm:$0xf] %vm1534_vm9, %v1698_v21  ;;  %v1476_v22 = vadd.f32 %v2622_v17, %v1459_v23  ;;  %v1460_v25 = vmul.f32 %v1964_v48, %v2617_v2 }
 0x18e   : > { %v873_v60 = vpop.f32.mrb[12].mxu1 }
 0x18f   : > { %v1865_v30 = vpop.f32.mrb[13].mxu1  ;;  %v1486_v31 = vmax.f32 %v1476_v22, 0.0  ;;  %v1477_v10 = vadd.f32 %v2622_v17, %v1460_v25 }
 0x190   : > { %v876_v32 = vpop.f32.mrb[14].mxu1  ;;  %v1417_v45 = vpop.f32.mrb[8].mxu0 }
 0x191   : > { %v1866_v12 = vpop.f32.mrb[15].mxu1  ;;  %v1699_v53 = vpack.c.bf16 %v1486_v31, %v1486_v31  ;;  %v1487_v33 = vmax.f32 %v1477_v10, 0.0  ;;  %v1965_v0 = vadd.f32 %v1417_v45, %v704_v51  ;;  %v1949_v34 = vpop.f32.mrb[9].mxu0 }
 0x192   : > { %v1420_v35 = vpop.f32.mrb[10].mxu0 }
 0x193   : > { %1537 = vst.msk [vmem:[%s2632_s22 + $0x8] sm:$0xf] %vm1534_vm9, %v1699_v53  ;;  %v1700_v14 = vpack.c.bf16 %v1487_v33, %v1487_v33  ;;  %v1461_v29 = vmul.f32 %v1965_v0, %v2617_v2  ;;  %v1966_v36 = vadd.f32 %v1420_v35, %v707_v8  ;;  %v1950_v55 = vpop.f32.mrb[11].mxu0 }
 0x195   : > { %1538 = vst.msk [vmem:[%s2632_s22 + $0xc] sm:$0xf] %vm1534_vm9, %v1700_v14  ;;  %v1478_v37 = vadd.f32 %v2622_v17, %v1461_v29  ;;  %v1462_v7 = vmul.f32 %v1966_v36, %v2617_v2 }
 0x196   : > { %v881_v44 = vpop.f32.mrb[16].mxu1 }
 0x197   : > { %v1869_v47 = vpop.f32.mrb[17].mxu1  ;;  %v1488_v57 = vmax.f32 %v1478_v37, 0.0  ;;  %v1479_v49 = vadd.f32 %v2622_v17, %v1462_v7 }
 0x198   : > { %v884_v39 = vpop.f32.mrb[18].mxu1  ;;  %v1425_v41 = vpop.f32.mrb[12].mxu0 }
 0x199   : > { %v1870_v50 = vpop.f32.mrb[19].mxu1  ;;  %v1701_v3 = vpack.c.bf16 %v1488_v57, %v1488_v57  ;;  %v1489_v38 = vmax.f32 %v1479_v49, 0.0  ;;  %v1967_v15 = vadd.f32 %v1425_v41, %v873_v60  ;;  %v1953_v54 = vpop.f32.mrb[13].mxu0 }
 0x19a   : > { %v1428_v56 = vpop.f32.mrb[14].mxu0 }
 0x19b   : > { %1539 = vst.msk [vmem:[%s2632_s22 + $0x10] sm:$0xf] %vm1534_vm9, %v1701_v3  ;;  %v1702_v1 = vpack.c.bf16 %v1489_v38, %v1489_v38  ;;  %v1463_v6 = vmul.f32 %v1967_v15, %v2617_v2  ;;  %v1968_v13 = vadd.f32 %v1428_v56, %v876_v32  ;;  %v1954_v27 = vpop.f32.mrb[15].mxu0 }
 0x19d   : > { %1540 = vst.msk [vmem:[%s2632_s22 + $0x14] sm:$0xf] %vm1534_vm9, %v1702_v1  ;;  %v1480_v28 = vadd.f32 %v2622_v17, %v1463_v6  ;;  %v1464_v51 = vmul.f32 %v1968_v13, %v2617_v2 }
 0x19f   : > { %v1490_v40 = vmax.f32 %v1480_v28, 0.0  ;;  %v1481_v8 = vadd.f32 %v2622_v17, %v1464_v51 }
 0x1a0   : > { %v1433_v52 = vpop.f32.mrb[16].mxu0 }
 0x1a1   : > { %v1703_v43 = vpack.c.bf16 %v1490_v40, %v1490_v40  ;;  %v1491_v46 = vmax.f32 %v1481_v8, 0.0  ;;  %v1969_v58 = vadd.f32 %v1433_v52, %v881_v44  ;;  %v1957_v42 = vpop.f32.mrb[17].mxu0 }
 0x1a2   : > { %v1436_v59 = vpop.f32.mrb[18].mxu0 }
 0x1a3   : > { %1541 = vst.msk [vmem:[%s2632_s22 + $0x18] sm:$0xf] %vm1534_vm9, %v1703_v43  ;;  %v1704_v61 = vpack.c.bf16 %v1491_v46, %v1491_v46  ;;  %v1465_v62 = vmul.f32 %v1969_v58, %v2617_v2  ;;  %v1970_v63 = vadd.f32 %v1436_v59, %v884_v39  ;;  %v1958_v4 = vpop.f32.mrb[19].mxu0 }
 0x1a5   : > { %1542 = vst.msk [vmem:[%s2632_s22 + $0x1c] sm:$0xf] %vm1534_vm9, %v1704_v61  ;;  %v1482_v11 = vadd.f32 %v2622_v17, %v1465_v62  ;;  %v1466_v20 = vmul.f32 %v1970_v63, %v2617_v2 }
 0x1a7   : > { %v1492_v5 = vmax.f32 %v1482_v11, 0.0  ;;  %v1483_v9 = vadd.f32 %v2622_v17, %v1466_v20 }
 0x1a9   : > { %v1705_v16 = vpack.c.bf16 %v1492_v5, %v1492_v5  ;;  %v1493_v18 = vmax.f32 %v1483_v9, 0.0 }
 0x1ab   : > { %1543 = vst.msk [vmem:[%s2632_s22 + $0x20] sm:$0xf] %vm1534_vm9, %v1705_v16  ;;  %v1706_v19 = vpack.c.bf16 %v1493_v18, %v1493_v18 }
 0x1ad   : > { %1544 = vst.msk [vmem:[%s2632_s22 + $0x24] sm:$0xf] %vm1534_vm9, %v1706_v19 }
 0x1ae PF: > { %s14_s15 = sadd.s32 1, %s2152_s15  }
 0x1af   : > { %p11_p4 = scmp.ge.s32.totalorder %s14_s15, 4  }
 0x1b1   :  { %13 = sbr.rel (!%p11_p4) target bundleno = 1 (0x1), region = 74 }

</bundles_post_ra>
